<compile_context>
chip_gen: v5e
topology: v5e:2x2
jax: 0.10.0
libtpu: 0.0.40
codegen_flags: <defaults>
</compile_context>

<pallas_src>
import math
import jax
import jax.numpy as jnp
from jax.experimental import pallas as pl
from jax.experimental.pallas import tpu as pltpu

OUT_CHANNELS = 16


def _round_up(x, m):
    return ((x + m - 1) // m) * m


def _sublane(dtype_bytes):
    # f32 -> 8, bf16 -> 16, int8/fp8 -> 32 sublane packing.
    return {4: 8, 2: 16, 1: 32}.get(dtype_bytes, 8)


# ---------------------------------------------------------------------------
# Kernels
# ---------------------------------------------------------------------------
def _mapreduce_kernel(w_ref, x_ref, o_ref):
    # w_ref: (16, C)   x_ref: (Bt, C, tn)   o_ref: (Bt, 16, tn)
    w = w_ref[...]
    for b in range(x_ref.shape[0]):        # static unroll over the batch tile
        o_ref[b] = jnp.dot(w, x_ref[b],
                           preferred_element_type=jnp.float32).astype(o_ref.dtype)


def _mapreduce_kernel_bias(w_ref, b_ref, x_ref, o_ref):
    # Same as above, plus a (16, 1) bias broadcast over the lane axis.
    w = w_ref[...]
    bias = b_ref[...]                      # (16, 1)
    for b in range(x_ref.shape[0]):
        acc = jnp.dot(w, x_ref[b], preferred_element_type=jnp.float32)
        o_ref[b] = (acc + bias).astype(o_ref.dtype)


# ---------------------------------------------------------------------------
# Tiling
# ---------------------------------------------------------------------------
def _choose_tiles(B, C, HW, dtype_bytes, *,
                  vmem_budget_bytes=24 << 20,   # padded, double-buffered budget
                  max_tile=32768,
                  min_payload_bytes=1 << 20,    # amortize ~0.35us per grid step
                  max_batch_tile=32,
                  min_grid_points=4):           # keep both v7x TCs busy
    """Pick (batch tile Bt, spatial/lane tile tn) from a padded VMEM budget."""
    sub = _sublane(dtype_bytes)
    c_pad = _round_up(C, sub)
    o_pad = _round_up(OUT_CHANNELS, sub)

    # Resident weight (16, C) + bias (16, 1), lane-padded, x2 buffer slots.
    resident = 2 * (OUT_CHANNELS * _round_up(max(C, 1), 128)
                    + OUT_CHANNELS * 128) * dtype_bytes
    headroom = 1 << 20
    stream_budget = max(vmem_budget_bytes - resident - headroom, 2 << 20)

    per_b_lane = (c_pad + o_pad) * dtype_bytes        # one copy, per batch row

    # Spatial (lane) tile: as wide as the double-buffered budget allows.
    tn_cap = stream_budget // (2 * per_b_lane)
    tn_cap = max(128, (tn_cap // 128) * 128)
    tn = HW if HW <= min(tn_cap, max_tile) else min(tn_cap, max_tile)

    # Batch tile: amortize per-grid-step overhead when H*W is small.
    per_b_step = per_b_lane * tn
    bt = 1
    if per_b_step < min_payload_bytes:
        bt_want = -(-min_payload_bytes // per_b_step)           # ceil
        bt_cap = max(1, stream_budget // (2 * per_b_step))
        bt = int(max(1, min(B, bt_want, bt_cap, max_batch_tile)))

    # v7x: guarantee enough grid points so both TensorCores get work
    # (no-op cost on v5e/v6e, which have a single TC).
    while (-(-B // bt)) * (-(-HW // tn)) < min_grid_points:
        if bt > 1:
            bt //= 2
        elif tn > 128:
            tn = max(128, (tn // 2) // 128 * 128)
        else:
            break
    return bt, tn


def _vmem_limit_bytes(bt, tn, C, dtype_bytes):
    """Explicit scoped-VMEM limit from the actual padded per-step footprint."""
    sub = _sublane(dtype_bytes)
    lane = _round_up(tn, 128)
    x_buf = 2 * bt * _round_up(C, sub) * lane * dtype_bytes
    o_buf = 2 * bt * _round_up(OUT_CHANNELS, sub) * lane * dtype_bytes
    w_buf = 2 * OUT_CHANNELS * _round_up(max(C, 1), 128) * dtype_bytes
    b_buf = 2 * OUT_CHANNELS * 128 * dtype_bytes
    total = x_buf + o_buf + w_buf + b_buf + (2 << 20)   # internal-scratch headroom
    # Floor well above tiny footprints; cap safely under v7x's 64 MiB physical.
    return int(min(max(total, 16 << 20), 48 << 20))


# ---------------------------------------------------------------------------
# Wrapper
# ---------------------------------------------------------------------------
def map_reduce(x_nchw, weight, bias=None):
    """1x1 conv (MapReduce.forward) via a Pallas W @ X matmul kernel.

    x_nchw : (B, C, H, W) float32
    weight : (16, C, 1, 1) float32  (PyTorch Conv2d weight layout)
    bias   : (16,) float32 or None (None == statically-zero bias fast path)
    returns: (B, 16, H, W) float32
    """
    B, C, H, W = x_nchw.shape
    HW = H * W

    x3 = x_nchw.reshape(B, C, HW)                 # free reshape, stays NCHW
    w_mat = weight.reshape(OUT_CHANNELS, C)       # (16, C)

    dtype_bytes = jnp.dtype(x_nchw.dtype).itemsize
    bt, tn = _choose_tiles(B, C, HW, dtype_bytes)
    n_b = pl.cdiv(B, bt)
    n_m = pl.cdiv(HW, tn)

    # Weight/bias: constant block index -> loaded once, stays resident.
    w_spec = pl.BlockSpec((OUT_CHANNELS, C), lambda b, m: (0, 0))
    # X / out tiles: lane-dense along M, batch-tiled along the first axis.
    x_spec = pl.BlockSpec((bt, C, tn), lambda b, m: (b, 0, m))
    o_spec = pl.BlockSpec((bt, OUT_CHANNELS, tn), lambda b, m: (b, 0, m))

    if bias is None:
        kernel = _mapreduce_kernel
        in_specs = [w_spec, x_spec]
        operands = (w_mat, x3)
    else:
        kernel = _mapreduce_kernel_bias
        b_col = bias.reshape(OUT_CHANNELS, 1)
        in_specs = [w_spec,
                    pl.BlockSpec((OUT_CHANNELS, 1), lambda b, m: (0, 0)),
                    x_spec]
        operands = (w_mat, b_col, x3)

    cost = pl.CostEstimate(
        flops=2 * OUT_CHANNELS * C * B * HW,
        bytes_accessed=dtype_bytes * (B * HW * (C + OUT_CHANNELS)
                                      + OUT_CHANNELS * C + OUT_CHANNELS),
        transcendentals=0,
    )

    out3 = pl.pallas_call(
        kernel,
        out_shape=jax.ShapeDtypeStruct((B, OUT_CHANNELS, HW), x_nchw.dtype),
        grid_spec=pltpu.PrefetchScalarGridSpec(
            num_scalar_prefetch=0,
            grid=(n_b, n_m),
            in_specs=in_specs,
            out_specs=o_spec,
        ),
        compiler_params=pltpu.CompilerParams(
            dimension_semantics=("parallel", "parallel"),
            vmem_limit_bytes=_vmem_limit_bytes(bt, tn, C, dtype_bytes),
        ),
        cost_estimate=cost,
    )(*operands)

    return out3.reshape(B, OUT_CHANNELS, H, W)


def init_params(key, channels):
    """Deterministic init matching nn.Conv2d defaults (kaiming-uniform weight,
    bias forced to 0 as in MapReduce.__init__)."""
    fan_in = channels * 1 * 1
    bound = 1.0 / math.sqrt(fan_in)
    weight = jax.random.uniform(
        key, (OUT_CHANNELS, channels, 1, 1),
        minval=-bound, maxval=bound, dtype=jnp.float32)
    bias = jnp.zeros((OUT_CHANNELS,), dtype=jnp.float32)
    return weight, bias


if __name__ == "__main__":
    key = jax.random.PRNGKey(0)
    k_x, k_w, k_b = jax.random.split(key, 3)

    B, C, H, W = 2, 4, 16, 16
    x = jax.random.normal(k_x, (B, C, H, W), dtype=jnp.float32)
    weight, bias = init_params(k_w, C)       # MapReduce hard-zeroes the bias

    # Fast path: bias is statically zero -> skip the operand and the add.
    out = jax.block_until_ready(map_reduce(x, weight, bias=None))
    ref = jnp.einsum("bchw,oc->bohw", x, weight.reshape(OUT_CHANNELS, C))
    assert out.shape == (B, OUT_CHANNELS, H, W)
    assert jnp.allclose(out, ref, atol=1e-5, rtol=1e-5)

    # Generic path: the module's bias is learnable (may be nonzero after
    # training), so verify the biased kernel too.
    bias_nz = jax.random.normal(k_b, (OUT_CHANNELS,), dtype=jnp.float32)
    out_b = jax.block_until_ready(map_reduce(x, weight, bias_nz))
    ref_b = ref + bias_nz.reshape(1, OUT_CHANNELS, 1, 1)
    assert jnp.allclose(out_b, ref_b, atol=1e-5, rtol=1e-5)

    print("KERNEL_OK")
</pallas_src>

<mosaic_0001>
module attributes {stable_mosaic.version = 11 : i64} {
  func.func @_mapreduce_kernel(%arg0: i32, %arg1: i32, %arg2: memref<16x4xf32, #tpu.memory_space<vmem>>, %arg3: memref<1x4x128xf32, #tpu.memory_space<vmem>>, %arg4: memref<1x16x128xf32, #tpu.memory_space<vmem>>) attributes {dimension_semantics = [#tpu.dimension_semantics<parallel>, #tpu.dimension_semantics<parallel>], iteration_bounds = array<i64: 2, 2>, scalar_prefetch = 0 : i64, scratch_operands = 0 : i64, tpu.core_type = #tpu.core_type<tc>, window_params = [{pipeline_mode = #tpu.pipeline_mode<synchronous>, transform_indices = @transform_0, window_bounds = array<i64: 16, 4>}, {transform_indices = @transform_1, window_bounds = array<i64: 1, 4, 128>}, {transform_indices = @transform_2, window_bounds = array<i64: 1, 16, 128>}]} {
    %c0 = arith.constant 0 : index
    %c0_0 = arith.constant 0 : index
    %0 = vector.load %arg2[%c0, %c0_0] : memref<16x4xf32, #tpu.memory_space<vmem>>, vector<16x4xf32>
    %c0_1 = arith.constant 0 : index
    %c0_2 = arith.constant 0 : index
    %c0_3 = arith.constant 0 : index
    %1 = vector.load %arg3[%c0_1, %c0_2, %c0_3] : memref<1x4x128xf32, #tpu.memory_space<vmem>>, vector<1x4x128xf32>
    %2 = vector.shape_cast %1 : vector<1x4x128xf32> to vector<4x128xf32>
    %cst = arith.constant dense<0.000000e+00> : vector<16x128xf32>
    %3 = tpu.matmul %0, %2, %cst {dimension_numbers = #tpu.dot_dimension_numbers<[1], [0], [0], [1], [0, 0, 1, 1], [], []>} : vector<16x4xf32>, vector<4x128xf32>, vector<16x128xf32> -> vector<16x128xf32>
    %c0_4 = arith.constant 0 : index
    %c0_5 = arith.constant 0 : index
    %c0_6 = arith.constant 0 : index
    %4 = vector.load %arg4[%c0_4, %c0_5, %c0_6] : memref<1x16x128xf32, #tpu.memory_space<vmem>>, vector<1x16x128xf32>
    %5 = vector.shape_cast %4 : vector<1x16x128xf32> to vector<16x128xf32>
    %6 = vector.shape_cast %3 : vector<16x128xf32> to vector<1x16x128xf32>
    tpu.vector_store %arg4[%c0_4, %c0_5, %c0_6], %6 {strides = array<i32>} : memref<1x16x128xf32, #tpu.memory_space<vmem>>, vector<1x16x128xf32>,
    return
  }
  func.func @transform_0(%arg0: i32, %arg1: i32) -> (i32, i32) {
    %c0_i32 = arith.constant 0 : i32
    %c0_i32_0 = arith.constant 0 : i32
    %c0_i32_1 = arith.constant 0 : i32
    return %c0_i32, %c0_i32_0 : i32, i32
  }
  func.func @transform_1(%arg0: i32, %arg1: i32) -> (i32, i32, i32) {
    %c0_i32 = arith.constant 0 : i32
    %c0_i32_0 = arith.constant 0 : i32
    return %arg0, %c0_i32, %arg1 : i32, i32, i32
  }
  func.func @transform_2(%arg0: i32, %arg1: i32) -> (i32, i32, i32) {
    %c0_i32 = arith.constant 0 : i32
    %c0_i32_0 = arith.constant 0 : i32
    return %arg0, %c0_i32, %arg1 : i32, i32, i32
  }
}

</mosaic_0001>

<bundles_post_ra>
// kernel: tpu_custom_call.1
= control target key start
LH: loop header
LB: loop body
LE: loop exit
PB: predicated region body
PF: predicated region fallthrough
CT: control target
= control target key end

     0   :  { %7 = vsyncpa [#allocation3], 0  ;;  %s637_s0 = inlined_call_operand.vmem [shape: f32[16,4], index: 0, kind: input, shape index: {}]   ;;  %s638_s1 = inlined_call_operand.vmem [shape: f32[2,4,256], index: 1, kind: input, shape index: {}]   ;;  %s639_s2 = inlined_call_operand.hbm [shape: f32[2,16,256], index: 2, kind: output, shape index: {}]  }
   0x1   :  { %9 = vsyncpa [#allocation3 + $0x1], 0  ;;  %s509_s9 = smov 0   ;;  %s511_s10 = smov 0  }
   0x2   :  { %s513_s11 = smov 0   ;;  %s515_s12 = smov 0  }
   0x3   :  { %s517_s13 = smov 0   ;;  %s519_s14 = smov 0  }
   0x4   :  { %s521_s15 = smov 0   ;;  %s523_s16 = smov 0  }
   0x5 LB: > { %s304_s17 = sadd.s32 4294967295, %s489_s16   ;;  %s305_s18 = sadd.s32 4294967294, %s489_s16   ;;  %s489_s16 = sphi %s523_s16, %s15_s16   ;;  %s485_s15 = sphi %s521_s15, %s648_s15   ;;  %s481_s14 = sphi %s519_s14, %s647_s14   ;;  %s477_s13 = sphi %s517_s13, %s646_s13   ;;  %s473_s12 = sphi %s515_s12, %s645_s12   ;;  %s469_s11 = sphi %s513_s11, %s644_s11   ;;  %s465_s10 = sphi %s511_s10, %s643_s10   ;;  %s461_s9 = sphi %s509_s9, %s642_s9  }
   0x6   : > { %s24_s19 = sadd.s32 1, %s481_s14  ;;  %s27_s20 = sadd.s32 1, %s485_s15 }
   0x7   : > { %p25_p0 = scmp.ge.s32.totalorder %s24_s19, 2  ;;  %p95_p1 = scmp.ne.s32.totalorder %s469_s11, %s465_s10 }
   0x8   : > { %p96_p2 = scmp.eq.s32.totalorder %s304_s17, 3  ;;  %p101_p5 = scmp.ne.s32.totalorder %s465_s10, %s461_s9 }
   0x9   : > { %s650_s19 = smov (%p25_p0, %s24_s19), 0  ;;  %s652_s20 = smov (!%p25_p0, %s27_s20), %s485_s15 }
   0xa   : > { %s81_s21 = ssub.s32 %s481_s14, %s650_s19  ;;  %p560_p3 = por %p96_p2, %p95_p1 }
   0xb   : > { %p29_p4 = scmp.ge.s32.totalorder %s652_s20, 2  ;;  %p102_p6 = scmp.eq.s32.totalorder %s305_s18, 3 }
   0xc   : > { %p308_p7 = scmp.ge.s32.totalorder %s489_s16, 1  ;;  %p134_p9 = scmp.lt.s32.totalorder %s489_s16, 5 }
   0xd   : > { %s654_s20 = smov (%p29_p4, %s652_s20), 0  ;;  %p569_p8 = por %p102_p6, %p101_p5 }
   0xe   : > { %s80_s24 = ssub.s32 %s485_s15, %s654_s20  ;;  %s85_s25 = sadd.s32 1, %s469_s11 }
   0xf   : > { %s82_s26 = sor.u32 %s81_s21, %s80_s24  ;;  %p135_p10 = pnand %p308_p7, %p134_p9 }
  0x10   : > { %p83_p11 = scmp.eq.s32.totalorder %s82_s26, 0  ;;  %p159_p12 = scmp.lt.s32.totalorder (!%p135_p10), %s477_s13, 1 }
  0x11   : > { %138 = sbr.rel (%p135_p10) target bundleno = 162 (0xa2), region = 28  ;;  %p161_p13 = scmp.lt.s32.totalorder (!%p135_p10), %s473_s12, 1 }
  0x12   : > { %s578_s27 = scalar_select %p83_p11, %s469_s11, %s85_s25  }
  0x13   : > { %s316_s24 = sshll.u32 (!%p135_p10), %s477_s13, 2  ;;  %s156_s25 = sand.u32 (!%p135_p10), 1, %s465_s10  }
  0x14   : > { %s217_s26 = sadd.s32 (!%p135_p10), %s473_s12, %s316_s24  ;;  %s415_s21 = scalar_lea.hbm (!%p135_p10), %s639_s2, 64 }
  0x16   : > { %s160_s28 = scalar_select %p159_p12, %s477_s13, 1  ;;  %vm177_vm0 = vcmask 1043456   ;;  %v167_v0 = vld [vmem:[%s637_s0] sm:$0xff]  ;;  %vm170_vm1 = vcmask 31744   ;;  %v168_v1 = vld [vmem:[%s637_s0 + $0x8] sm:$0xff] }
  0x17   : > { %s162_s29 = scalar_select %p161_p13, %s473_s12, 1 }
  0x18   : > { %s310_s30 = sshll.u32 %s160_s28, 1  ;;  %s309_s28 = sshll.u32 %s156_s25, 4 }
  0x19   : > { %s164_s3 = sadd.s32 %s310_s30, %s162_s29  ;;  %s317_s29 = sshll.u32 %s217_s26, 3 }
  0x1a   : > { %s311_s4 = sshll.u32 %s164_s3, 2  ;;  %s158_s5 = scalar_lea.vmem [#allocation2], %s309_s28 }
  0x1b   : > { %s166_s7 = scalar_lea.vmem %s638_s1, %s311_s4  ;;  %s219_s4 = scalar_lea.hbm %s639_s2, %s317_s29 }
  0x1c   : > { %v169_v2 = vld [vmem:[%s166_s7] sm:$0xf]  ;;  %s220_s6 = sshll.u32 %s158_s5, 4  ;;  %s222_s8 = sshll.u32 %s219_s4, 4  ;;  %s221_s6 = int_to_ptr.vmem [resolvable:$true] %s220_s6  ;;  %s223_s8 = int_to_ptr.hbm [resolvable:$true] %s222_s8 }
  0x1d   : > { %312 = vmatpush.msk.msra.mxu0 %vm177_vm0, %v169_v2  ;;  %320 = vmatpush.msk.msra.mxu1 %vm177_vm0, %v169_v2  ;;  %s207_s7 = scalar_lea.sflag [#allocation3], %s156_s25  ;;  %s409_s13 = sshra.s32 %s223_s8, 4  ;;  %s410_s13 = int_to_ptr.hbm [resolvable:$true] %s409_s13 }
  0x1e   : > { %313 = vmatmul.msk.f32.vlgmr.msra.gmra.mxu0 %vm170_vm1, %v167_v0  ;;  %314 = vmatmul.msk.f32.vlgmr.msra.gmra.mxu1 %vm170_vm1, %v168_v1  ;;  %s411_s12 = scalar_lea.hbm %s410_s13, 16  ;;  %p416_p4 = scmp.lt.s32.totalorder %s410_s13, %s639_s2 }
  0x1f   : > { %p412_p0 = scmp.ne.s32.totalorder %s410_s13, %s411_s12  ;;  %p417_p5 = scmp.lt.s32.totalorder %s415_s21, %s411_s12 }
  0x21   : > { %p413_p1 = pnand %p412_p0, %p560_p3  ;;  %p418_p6 = por %p417_p5, %p416_p4 }
  0x23   : > { %p414_p2 = pneg %p413_p1 }
  0x25   : > { %p419_p7 = pnand %p418_p6, %p414_p2 }
  0x9b   : > { %v198_v3 = vpop.f32.mrf.mxu0  ;;  %v201_v4 = vpop.f32.mrf.mxu1 }
  0x9c   : > { %204 = vst [vmem:[%s158_s5] sm:$0xff] %v198_v3 }
  0x9d   : > { %205 = vst [vmem:[%s158_s5 + $0x8] sm:$0xff] %v201_v4 }
  0x9e   : > { %422 = shalt.err (!%p419_p7)
}
  0x9f   : > { %s491_s25 = smov 128   ;;  %s492_s28 = smov 256  }
  0xa0   : > { %s493_s29 = smov 8  }
  0xa1   : > { %321 = dma.vmem_to_hbm [thread:$0]  (%p560_p3), %s221_s6, 256, %s223_s8, %s207_s7, %s491_s25, %s492_s28, %s493_s29  }
  0xa2 PF: > { %p327_p9 = scmp.ge.s32.totalorder %s489_s16, 2  ;;  %s237_s30 = sand.u32 1, %s461_s9  }
  0xa3   : > { %s238_s3 = scalar_lea.sflag [#allocation3], %s237_s30 }
  0xa4   : > { %p324_p10 = pnand %p327_p9, %p569_p8 }
  0xa6   : > { %p325_p11 = pneg %p324_p10 }
  0xa8   : > { %456 = dma.done.wait (%p325_p11), %s238_s3, 256  }
  0xa9   : > { %458 = vsyncadd (%p325_p11), %s238_s3, 4294967040  ;;  %s15_s16 = sadd.s32 1, %s489_s16   ;;  %s642_s9 = smov %s465_s10 }
  0xaa   : > { %p12_p12 = scmp.ge.s32.totalorder %s15_s16, 6   ;;  %s643_s10 = smov %s469_s11 }
  0xab   : > { %s644_s11 = smov %s578_s27  ;;  %s645_s12 = smov %s481_s14 }
  0xac   : > { %s646_s13 = smov %s485_s15  ;;  %s647_s14 = smov %s650_s19 }
  0xad   : > { %s648_s15 = smov %s654_s20  ;;  %14 = sbr.rel (!%p12_p12) target bundleno = 5 (0x5), region = 63 }
  0xb2   :  { %244 = vsyncpa [#allocation3], 1 }
  0xb3   :  { %246 = vsyncpa [#allocation3 + $0x1], 1 }

</bundles_post_ra>
